<compile_context>
chip_gen: v7x
topology: tpu7x:2x2x1
jax: 0.10.0
libtpu: 0.0.40
codegen_flags: <defaults>
</compile_context>

<pallas_src>
import jax
import jax.numpy as jnp
from jax.experimental import pallas as pl
from jax.experimental.pallas import tpu as pltpu


MAX_TM = 4096  # rows of the patch matrix per grid step (sweep 2048/4096/8192)


def stem_kernel(p_ref, w_ref, bias_ref, o_ref):
    """Fused (im2col-matmul conv, BN scale pre-folded into w) + bias + ReLU.

    p_ref:    (TM, Kpad)  bf16 patch tile (pipelined)
    w_ref:    (Kpad, OC)  bf16 conv weight, BN scale folded in (VMEM resident)
    bias_ref: (1, OC)     f32 folded BN bias (VMEM resident)
    o_ref:    (TM, OC)    bf16 output tile
    """
    acc = jnp.dot(p_ref[...], w_ref[...], preferred_element_type=jnp.float32)
    o_ref[...] = jnp.maximum(acc + bias_ref[...], 0.0).astype(o_ref.dtype)


def _round_up(x, m):
    return (x + m - 1) // m * m


def _matmul_bias_relu(patches, w_mat, bias2d, tm, m_true, k_true):
    """pallas_call wrapper: (Mpad, Kpad) @ (Kpad, OC) + bias, ReLU -> (Mpad, OC) bf16."""
    m_pad, k_pad = patches.shape
    oc = w_mat.shape[1]
    grid = (m_pad // tm,)

    cost = pl.CostEstimate(
        flops=2 * m_true * k_true * oc,
        transcendentals=0,
        bytes_accessed=m_true * k_true * 2 + k_true * oc * 2 + m_true * oc * 2 + oc * 4,
    )

    return pl.pallas_call(
        stem_kernel,
        out_shape=jax.ShapeDtypeStruct((m_pad, oc), jnp.bfloat16),
        grid=grid,
        in_specs=[
            pl.BlockSpec((tm, k_pad), lambda i: (i, 0)),   # patch tile (pipelined)
            pl.BlockSpec((k_pad, oc), lambda i: (0, 0)),   # folded weight (resident)
            pl.BlockSpec((1, oc), lambda i: (0, 0)),       # folded BN bias (resident)
        ],
        out_specs=pl.BlockSpec((tm, oc), lambda i: (i, 0)),
        compiler_params=pltpu.CompilerParams(
            dimension_semantics=("parallel",),
        ),
        cost_estimate=cost,
    )(patches, w_mat, bias2d)


def classic_stem_forward(x_nchw, conv_w, gamma, beta, running_mean, running_var,
                         eps=1e-5, stride=2, out_layout="NCHW"):
    """x_nchw: (N, 3, H, W) f32. conv_w: (OC, 3, 7, 7). Returns (N, OC, Ho, Wo) bf16
    (or (N, Ho, Wo, OC) bf16 if out_layout == "NHWC")."""
    N, C, H, W = x_nchw.shape
    OC, Cw, KH, KW = conv_w.shape
    assert Cw == C
    PAD = 3
    Ho = (H + 2 * PAD - KH) // stride + 1
    Wo = (W + 2 * PAD - KW) // stride + 1

    # ---- glue: bf16 + NHWC *before* im2col so every intermediate is half-width ----
    x_nhwc = jnp.transpose(x_nchw, (0, 2, 3, 1)).astype(jnp.bfloat16)
    xp = jnp.pad(x_nhwc, ((0, 0), (PAD, PAD), (PAD, PAD), (0, 0)))

    # im2col directly in (m=(n,ho,wo), k=(kh,kw,c)) order: single concatenate,
    # no 5-D transpose; K padding zeros folded into the same concat.
    K = KH * KW * C                               # 147
    Kpad = _round_up(K, 16)                       # 160 (full-extent block dims)
    pieces = []
    for kh in range(KH):
        for kw in range(KW):
            pieces.append(
                xp[:, kh:kh + stride * Ho:stride, kw:kw + stride * Wo:stride, :])
    if Kpad > K:
        pieces.append(jnp.zeros((N, Ho, Wo, Kpad - K), dtype=jnp.bfloat16))
    patches = jnp.concatenate(pieces, axis=-1).reshape(N * Ho * Wo, Kpad)
    M = N * Ho * Wo

    # ---- fold eval-mode BatchNorm: scale into weights, bias separate ----
    scale = gamma / jnp.sqrt(running_var + eps)                  # (OC,)
    bias = beta - running_mean * scale                           # (OC,)
    # (OC, C, KH, KW) -> (KH, KW, C, OC) -> (K, OC): matches the patch K order.
    w_mat = conv_w.transpose(2, 3, 1, 0).reshape(K, OC) * scale[None, :]
    w_mat = jnp.pad(w_mat, ((0, Kpad - K), (0, 0))).astype(jnp.bfloat16)
    bias2d = bias.reshape(1, OC).astype(jnp.float32)

    # ---- M tiling: one full-extent block for small M, else TM = MAX_TM rows ----
    if M <= MAX_TM:
        TM = M                                    # full-extent block, no alignment needed
        patches_p = patches
    else:
        TM = MAX_TM
        Mpad = _round_up(M, TM)
        patches_p = jnp.pad(patches, ((0, Mpad - M), (0, 0))) if Mpad > M else patches

    try:
        out_flat = _matmul_bias_relu(patches_p, w_mat, bias2d, TM, M, K)
    except Exception:
        # Defensive fallback: if this Mosaic version rejects the 160-wide K tile,
        # re-pad K to the lane-aligned 256 and retry (extra HBM bytes, same math).
        extra = 256 - Kpad
        out_flat = _matmul_bias_relu(
            jnp.pad(patches_p, ((0, 0), (0, extra))),
            jnp.pad(w_mat, ((0, extra), (0, 0))),
            bias2d, TM, M, K)

    # Rows [M:Mpad] hold ReLU(bias) from the zero-padded patches; must stay sliced off.
    out_nhwc = out_flat[:M].reshape(N, Ho, Wo, OC)
    if out_layout == "NHWC":
        return out_nhwc                            # skips a full HBM round-trip
    return jnp.transpose(out_nhwc, (0, 3, 1, 2))   # NCHW: matches the PyTorch module


def reference_forward(x_nchw, conv_w, gamma, beta, running_mean, running_var,
                      eps=1e-5, stride=2):
    """Pure-JAX f32 reference (lax conv) for correctness check."""
    y = jax.lax.conv_general_dilated(
        x_nchw, conv_w,
        window_strides=(stride, stride),
        padding=((3, 3), (3, 3)),
        dimension_numbers=("NCHW", "OIHW", "NCHW"),
    )
    scale = (gamma / jnp.sqrt(running_var + eps)).reshape(1, -1, 1, 1)
    bias = (beta - running_mean * gamma / jnp.sqrt(running_var + eps)).reshape(1, -1, 1, 1)
    return jnp.maximum(y * scale + bias, 0.0)


if __name__ == "__main__":
    key = jax.random.PRNGKey(0)
    k_x, k_w, k_g, k_b, k_m, k_v = jax.random.split(key, 6)

    N, C, H, W = 2, 3, 16, 16
    INPLANES = 64

    x = jax.random.normal(k_x, (N, C, H, W), dtype=jnp.float32)
    conv_w = jax.random.normal(k_w, (INPLANES, C, 7, 7), dtype=jnp.float32) * 0.05
    gamma = 1.0 + 0.1 * jax.random.normal(k_g, (INPLANES,), dtype=jnp.float32)
    beta = 0.1 * jax.random.normal(k_b, (INPLANES,), dtype=jnp.float32)
    running_mean = 0.1 * jax.random.normal(k_m, (INPLANES,), dtype=jnp.float32)
    running_var = 1.0 + 0.1 * jax.nn.softplus(
        jax.random.normal(k_v, (INPLANES,), dtype=jnp.float32))

    out = classic_stem_forward(x, conv_w, gamma, beta, running_mean, running_var)
    out = jax.block_until_ready(out)

    ref = reference_forward(x, conv_w, gamma, beta, running_mean, running_var)
    ref = jax.block_until_ready(ref)

    assert out.shape == (N, INPLANES, 8, 8), out.shape
    assert out.dtype == jnp.bfloat16, out.dtype
    # bf16 matmul inputs + bf16 output (f32 accumulate) vs f32 reference.
    max_err = float(jnp.max(jnp.abs(out.astype(jnp.float32) - ref)))
    assert max_err < 7.5e-2, max_err

    print("KERNEL_OK")
</pallas_src>

<mosaic_0001>
module attributes {stable_mosaic.version = 11 : i64} {
  func.func @stem_kernel(%arg0: i32, %arg1: memref<128x160xbf16, #tpu.memory_space<vmem>>, %arg2: memref<160x64xbf16, #tpu.memory_space<vmem>>, %arg3: memref<1x64xf32, #tpu.memory_space<vmem>>, %arg4: memref<128x64xbf16, #tpu.memory_space<vmem>>) attributes {dimension_semantics = [#tpu.dimension_semantics<parallel>], iteration_bounds = array<i64: 1>, scalar_prefetch = 0 : i64, scratch_operands = 0 : i64, tpu.core_type = #tpu.core_type<tc>, window_params = [{transform_indices = @transform_0, window_bounds = array<i64: 128, 160>}, {pipeline_mode = #tpu.pipeline_mode<synchronous>, transform_indices = @transform_1, window_bounds = array<i64: 160, 64>}, {pipeline_mode = #tpu.pipeline_mode<synchronous>, transform_indices = @transform_2, window_bounds = array<i64: 1, 64>}, {transform_indices = @transform_3, window_bounds = array<i64: 128, 64>}]} {
    %c0 = arith.constant 0 : index
    %c0_0 = arith.constant 0 : index
    %0 = vector.load %arg1[%c0, %c0_0] : memref<128x160xbf16, #tpu.memory_space<vmem>>, vector<128x160xbf16>
    %c0_1 = arith.constant 0 : index
    %c0_2 = arith.constant 0 : index
    %1 = vector.load %arg2[%c0_1, %c0_2] : memref<160x64xbf16, #tpu.memory_space<vmem>>, vector<160x64xbf16>
    %cst = arith.constant dense<0.000000e+00> : vector<128x64xf32>
    %2 = tpu.matmul %0, %1, %cst {dimension_numbers = #tpu.dot_dimension_numbers<[1], [0], [0], [1], [0, 0, 1, 1], [], []>} : vector<128x160xbf16>, vector<160x64xbf16>, vector<128x64xf32> -> vector<128x64xf32>
    %c0_3 = arith.constant 0 : index
    %c0_4 = arith.constant 0 : index
    %3 = vector.load %arg3[%c0_3, %c0_4] : memref<1x64xf32, #tpu.memory_space<vmem>>, vector<1x64xf32>
    %4 = vector.broadcast %3 : vector<1x64xf32> to vector<128x64xf32>
    %5 = arith.addf %2, %4 : vector<128x64xf32>
    %cst_5 = arith.constant 0.000000e+00 : f32
    %6 = vector.broadcast %cst_5 : f32 to vector<128x64xf32>
    %7 = arith.maximumf %5, %6 : vector<128x64xf32>
    %8 = arith.truncf %7 : vector<128x64xf32> to vector<128x64xbf16>
    %c0_6 = arith.constant 0 : index
    %c0_7 = arith.constant 0 : index
    %9 = vector.load %arg4[%c0_6, %c0_7] : memref<128x64xbf16, #tpu.memory_space<vmem>>, vector<128x64xbf16>
    tpu.vector_store %arg4[%c0_6, %c0_7], %8 {strides = array<i32>} : memref<128x64xbf16, #tpu.memory_space<vmem>>, vector<128x64xbf16>,
    return
  }
  func.func @transform_0(%arg0: i32) -> (i32, i32) {
    %c0_i32 = arith.constant 0 : i32
    %c0_i32_0 = arith.constant 0 : i32
    return %arg0, %c0_i32 : i32, i32
  }
  func.func @transform_1(%arg0: i32) -> (i32, i32) {
    %c0_i32 = arith.constant 0 : i32
    %c0_i32_0 = arith.constant 0 : i32
    %c0_i32_1 = arith.constant 0 : i32
    return %c0_i32, %c0_i32_0 : i32, i32
  }
  func.func @transform_2(%arg0: i32) -> (i32, i32) {
    %c0_i32 = arith.constant 0 : i32
    %c0_i32_0 = arith.constant 0 : i32
    %c0_i32_1 = arith.constant 0 : i32
    return %c0_i32, %c0_i32_0 : i32, i32
  }
  func.func @transform_3(%arg0: i32) -> (i32, i32) {
    %c0_i32 = arith.constant 0 : i32
    %c0_i32_0 = arith.constant 0 : i32
    return %arg0, %c0_i32 : i32, i32
  }
}

module attributes {stable_mosaic.version = 11 : i64} {
  func.func @stem_kernel(%arg0: i32, %arg1: memref<128x256xbf16, #tpu.memory_space<vmem>>, %arg2: memref<256x64xbf16, #tpu.memory_space<vmem>>, %arg3: memref<1x64xf32, #tpu.memory_space<vmem>>, %arg4: memref<128x64xbf16, #tpu.memory_space<vmem>>) attributes {dimension_semantics = [#tpu.dimension_semantics<parallel>], iteration_bounds = array<i64: 1>, scalar_prefetch = 0 : i64, scratch_operands = 0 : i64, tpu.core_type = #tpu.core_type<tc>, window_params = [{transform_indices = @transform_0, window_bounds = array<i64: 128, 256>}, {pipeline_mode = #tpu.pipeline_mode<synchronous>, transform_indices = @transform_1, window_bounds = array<i64: 256, 64>}, {pipeline_mode = #tpu.pipeline_mode<synchronous>, transform_indices = @transform_2, window_bounds = array<i64: 1, 64>}, {transform_indices = @transform_3, window_bounds = array<i64: 128, 64>}]} {
    %c0 = arith.constant 0 : index
    %c0_0 = arith.constant 0 : index
    %0 = vector.load %arg1[%c0, %c0_0] : memref<128x256xbf16, #tpu.memory_space<vmem>>, vector<128x256xbf16>
    %c0_1 = arith.constant 0 : index
    %c0_2 = arith.constant 0 : index
    %1 = vector.load %arg2[%c0_1, %c0_2] : memref<256x64xbf16, #tpu.memory_space<vmem>>, vector<256x64xbf16>
    %cst = arith.constant dense<0.000000e+00> : vector<128x64xf32>
    %2 = tpu.matmul %0, %1, %cst {dimension_numbers = #tpu.dot_dimension_numbers<[1], [0], [0], [1], [0, 0, 1, 1], [], []>} : vector<128x256xbf16>, vector<256x64xbf16>, vector<128x64xf32> -> vector<128x64xf32>
    %c0_3 = arith.constant 0 : index
    %c0_4 = arith.constant 0 : index
    %3 = vector.load %arg3[%c0_3, %c0_4] : memref<1x64xf32, #tpu.memory_space<vmem>>, vector<1x64xf32>
    %4 = vector.broadcast %3 : vector<1x64xf32> to vector<128x64xf32>
    %5 = arith.addf %2, %4 : vector<128x64xf32>
    %cst_5 = arith.constant 0.000000e+00 : f32
    %6 = vector.broadcast %cst_5 : f32 to vector<128x64xf32>
    %7 = arith.maximumf %5, %6 : vector<128x64xf32>
    %8 = arith.truncf %7 : vector<128x64xf32> to vector<128x64xbf16>
    %c0_6 = arith.constant 0 : index
    %c0_7 = arith.constant 0 : index
    %9 = vector.load %arg4[%c0_6, %c0_7] : memref<128x64xbf16, #tpu.memory_space<vmem>>, vector<128x64xbf16>
    tpu.vector_store %arg4[%c0_6, %c0_7], %8 {strides = array<i32>} : memref<128x64xbf16, #tpu.memory_space<vmem>>, vector<128x64xbf16>,
    return
  }
  func.func @transform_0(%arg0: i32) -> (i32, i32) {
    %c0_i32 = arith.constant 0 : i32
    %c0_i32_0 = arith.constant 0 : i32
    return %arg0, %c0_i32 : i32, i32
  }
  func.func @transform_1(%arg0: i32) -> (i32, i32) {
    %c0_i32 = arith.constant 0 : i32
    %c0_i32_0 = arith.constant 0 : i32
    %c0_i32_1 = arith.constant 0 : i32
    return %c0_i32, %c0_i32_0 : i32, i32
  }
  func.func @transform_2(%arg0: i32) -> (i32, i32) {
    %c0_i32 = arith.constant 0 : i32
    %c0_i32_0 = arith.constant 0 : i32
    %c0_i32_1 = arith.constant 0 : i32
    return %c0_i32, %c0_i32_0 : i32, i32
  }
  func.func @transform_3(%arg0: i32) -> (i32, i32) {
    %c0_i32 = arith.constant 0 : i32
    %c0_i32_0 = arith.constant 0 : i32
    return %arg0, %c0_i32 : i32, i32
  }
}

</mosaic_0001>

<bundles_post_ra>
// kernel: tpu_custom_call.1
= control target key start
LH: loop header
LB: loop body
LE: loop exit
PB: predicated region body
PF: predicated region fallthrough
CT: control target
= control target key end

     0   :  { %v535_v0 = vmov 0   ;;  %vm190_vm0 = vcmask 261120   ;;  %vm392_vm1 = vcmask 519168   ;;  %s727_s1 = inlined_call_operand.vmem [shape: bf16[160,64], index: 1, kind: input, shape index: {}]   ;;  %s728_s0 = inlined_call_operand.vmem [shape: bf16[128,160], index: 0, kind: input, shape index: {}]   ;;  %s729_s2 = inlined_call_operand.vmem [shape: f32[1,64], index: 2, kind: input, shape index: {}]   ;;  %s730_s3 = inlined_call_operand.vmem [shape: bf16[128,64], index: 3, kind: output, shape index: {}]  }
   0x1   :  { %215 = vmatprep.subr.bf16.mxu0 %v535_v0  ;;  %480 = vmatprep.subr.bf16.mxu1 %v535_v0  ;;  %v501_v1 = vld [vmem:[%s727_s1] sm:$0xff]   ;;  %v502_v2 = vld [vmem:[%s727_s1 + $0x8] sm:$0xff]   ;;  %v503_v3 = vld [vmem:[%s727_s1 + $0x10] sm:$0xff]  }
   0x2   :  { %216 = vmatpush1.bf16.msra.mxu0 %v501_v1  ;;  %490 = vmatpush1.bf16.msra.mxu1 %v501_v1  ;;  %v504_v4 = vld [vmem:[%s727_s1 + $0x18] sm:$0xff]   ;;  %v513_v5 = vld [vmem:[%s728_s0 + $0x4] ss:$8 sps:$4 sm:$0xff]   ;;  %v507_v9 = vld [vmem:[%s727_s1 + $0x30] sm:$0xff]  }
   0x3   :  { %217 = vmatprep.subr.bf16.mxu0 %v535_v0  ;;  %481 = vmatprep.subr.bf16.mxu1 %v535_v0  ;;  %v516_v6 = vld [vmem:[%s728_s0 + $0x44] ss:$8 sps:$4 sm:$0xff]   ;;  %v508_v10 = vld [vmem:[%s727_s1 + $0x38] sm:$0xff]   ;;  %v511_v13 = vld [vmem:[%s728_s0] ss:$8 sps:$4 sm:$0xff]  }
   0x4   :  { %440 = vmatprep.mubr.msk.bf16.mxu0 %vm190_vm0, %v513_v5  ;;  %v505_v7 = vld [vmem:[%s727_s1 + $0x20] sm:$0xff]   ;;  %444 = vmatprep.mubr.msk.bf16.mxu1 %vm190_vm0, %v516_v6  ;;  %v506_v8 = vld [vmem:[%s727_s1 + $0x28] sm:$0xff]   ;;  %v517_v15 = vld [vmem:[%s728_s0 + $0x14] ss:$8 sps:$4 sm:$0xff]  }
   0x5   :  { %v509_v11 = vld [vmem:[%s727_s1 + $0x40] sm:$0xff]   ;;  %v510_v12 = vld [vmem:[%s727_s1 + $0x48] sm:$0xff]   ;;  %v519_v16 = vld [vmem:[%s728_s0 + $0x54] ss:$8 sps:$4 sm:$0xff]  }
   0x6   :  { %218 = vmatpush1.bf16.msra.mxu0 %v502_v2  ;;  %491 = vmatpush1.bf16.msra.mxu1 %v502_v2  ;;  %v514_v14 = vld [vmem:[%s728_s0 + $0x40] ss:$8 sps:$4 sm:$0xff]   ;;  %v521_v17 = vld [vmem:[%s728_s0 + $0x10] ss:$8 sps:$4 sm:$0xff]   ;;  %v523_v19 = vld [vmem:[%s728_s0 + $0x24] ss:$8 sps:$4 sm:$0xff]  }
   0x7   :  { %219 = vmatprep.subr.bf16.mxu0 %v535_v0  ;;  %482 = vmatprep.subr.bf16.mxu1 %v535_v0  ;;  %v522_v18 = vld [vmem:[%s728_s0 + $0x50] ss:$8 sps:$4 sm:$0xff]   ;;  %v525_v20 = vld [vmem:[%s728_s0 + $0x64] ss:$8 sps:$4 sm:$0xff]   ;;  %v527_v21 = vld [vmem:[%s728_s0 + $0x20] ss:$8 sps:$4 sm:$0xff]  }
   0x8   :  { %v528_v22 = vld [vmem:[%s728_s0 + $0x60] ss:$8 sps:$4 sm:$0xff]   ;;  %v529_v23 = vld [vmem:[%s728_s0 + $0x34] ss:$8 sps:$4 sm:$0xff]   ;;  %v533_v25 = vld [vmem:[%s728_s0 + $0x30] ss:$8 sps:$4 sm:$0xff]  }
   0x9   :  { %v531_v24 = vld [vmem:[%s728_s0 + $0x74] ss:$8 sps:$4 sm:$0xff]   ;;  %v534_v26 = vld [vmem:[%s728_s0 + $0x70] ss:$8 sps:$4 sm:$0xff]   ;;  %v645_v27 = vld [vmem:[%s729_s2] ss:$0 sm:$0xff] }
   0xa   :  { %220 = vmatpush1.bf16.msra.mxu0 %v503_v3  ;;  %492 = vmatpush1.bf16.msra.mxu1 %v503_v3 }
   0xb   :  { %221 = vmatprep.subr.bf16.mxu0 %v535_v0  ;;  %483 = vmatprep.subr.bf16.mxu1 %v535_v0 }
   0xe   :  { %222 = vmatpush1.bf16.msra.mxu0 %v504_v4  ;;  %493 = vmatpush1.bf16.msra.mxu1 %v504_v4 }
   0xf   :  { %223 = vmatprep.subr.bf16.mxu0 %v535_v0  ;;  %484 = vmatprep.subr.bf16.mxu1 %v535_v0 }
  0x12   :  { %224 = vmatpush1.bf16.msra.mxu0 %v505_v7  ;;  %494 = vmatpush1.bf16.msra.mxu1 %v505_v7 }
  0x13   :  { %225 = vmatprep.subr.bf16.mxu0 %v535_v0  ;;  %485 = vmatprep.subr.bf16.mxu1 %v535_v0 }
  0x16   :  { %226 = vmatpush1.bf16.msra.mxu0 %v506_v8  ;;  %495 = vmatpush1.bf16.msra.mxu1 %v506_v8 }
  0x17   :  { %227 = vmatprep.subr.bf16.mxu0 %v535_v0  ;;  %486 = vmatprep.subr.bf16.mxu1 %v535_v0 }
  0x1a   :  { %228 = vmatpush1.bf16.msra.mxu0 %v507_v9  ;;  %496 = vmatpush1.bf16.msra.mxu1 %v507_v9 }
  0x1b   :  { %229 = vmatprep.subr.bf16.mxu0 %v535_v0  ;;  %487 = vmatprep.subr.bf16.mxu1 %v535_v0 }
  0x1e   :  { %230 = vmatpush1.bf16.msra.mxu0 %v508_v10  ;;  %497 = vmatpush1.bf16.msra.mxu1 %v508_v10 }
  0x1f   :  { %231 = vmatprep.subr.bf16.mxu0 %v535_v0  ;;  %488 = vmatprep.subr.bf16.mxu1 %v535_v0 }
  0x22   :  { %232 = vmatpush1.bf16.msra.mxu0 %v509_v11  ;;  %498 = vmatpush1.bf16.msra.mxu1 %v509_v11 }
  0x23   :  { %233 = vmatprep.subr.bf16.mxu0 %v535_v0  ;;  %489 = vmatprep.subr.bf16.mxu1 %v535_v0 }
  0x26   :  { %234 = vmatpush1.bf16.msra.mxu0 %v510_v12  ;;  %499 = vmatpush1.bf16.msra.mxu1 %v510_v12 }
  0x29   :  { %248 = vmatmul.mubr.bf16.vlgmr.msra.gmra.mrb[0].mxu0 %v511_v13  ;;  %280 = vmatmul.mubr.bf16.vlgmr.msra.gmra.mrb[0].mxu1 %v514_v14 }
  0x2a   :  { %441 = vmatprep.mubr.msk.bf16.mxu0 %vm190_vm0, %v517_v15  ;;  %445 = vmatprep.mubr.msk.bf16.mxu1 %vm190_vm0, %v519_v16 }
  0x31   :  { %256 = vmatmul.mubr.bf16.gmra.mrb[4].mxu0 %v521_v17  ;;  %288 = vmatmul.mubr.bf16.gmra.mrb[4].mxu1 %v522_v18 }
  0x32   :  { %442 = vmatprep.mubr.msk.bf16.mxu0 %vm190_vm0, %v523_v19  ;;  %446 = vmatprep.mubr.msk.bf16.mxu1 %vm190_vm0, %v525_v20 }
  0x39   :  { %264 = vmatmul.mubr.bf16.gmra.mrb[8].mxu0 %v527_v21  ;;  %296 = vmatmul.mubr.bf16.gmra.mrb[8].mxu1 %v528_v22 }
  0x3a   :  { %443 = vmatprep.mubr.msk.bf16.mxu0 %vm190_vm0, %v529_v23  ;;  %447 = vmatprep.mubr.msk.bf16.mxu1 %vm190_vm0, %v531_v24 }
  0x41   :  { %272 = vmatmul.mubr.bf16.gmra.mrb[12].mxu0 %v533_v25  ;;  %304 = vmatmul.mubr.bf16.gmra.mrb[12].mxu1 %v534_v26 }
  0xfc   :  { %v249_v28 = vpop.f32.mrb[0].mxu0  ;;  %v281_v29 = vpop.f32.mrb[0].mxu1 }
  0xfd   :  { %v250_v30 = vadd.f32 %v645_v27, %v249_v28  ;;  %v282_v31 = vadd.f32 %v645_v27, %v281_v29  ;;  %v251_v32 = vpop.f32.mrb[1].mxu0  ;;  %v283_v33 = vpop.f32.mrb[1].mxu1 }
  0xfe   :  { %v252_v34 = vpop.f32.mrb[2].mxu0  ;;  %v284_v35 = vpop.f32.mrb[2].mxu1 }
  0xff   :  { %v312_v36 = vmax.f32 %v250_v30, 0.0  ;;  %v320_v37 = vmax.f32 %v282_v31, 0.0  ;;  %v253_v38 = vadd.f32 %v645_v27, %v252_v34  ;;  %v285_v39 = vadd.f32 %v645_v27, %v284_v35  ;;  %v254_v40 = vpop.f32.mrb[3].mxu0  ;;  %v286_v41 = vpop.f32.mrb[3].mxu1 }
 0x101   :  { %v464_v42 = vpack.c.bf16 %v312_v36, %v312_v36  ;;  %v472_v43 = vpack.c.bf16 %v320_v37, %v320_v37  ;;  %v313_v44 = vmax.f32 %v253_v38, 0.0  ;;  %v321_v45 = vmax.f32 %v285_v39, 0.0 }
 0x103   :  { %393 = vst.msk [vmem:[%s730_s3] sm:$0xf] %vm392_vm1, %v464_v42  ;;  %401 = vst.msk [vmem:[%s730_s3 + $0x20] sm:$0xf] %vm392_vm1, %v472_v43  ;;  %v465_v46 = vpack.c.bf16 %v313_v44, %v313_v44  ;;  %v473_v47 = vpack.c.bf16 %v321_v45, %v321_v45 }
 0x104   :  { %v257_v48 = vpop.f32.mrb[4].mxu0  ;;  %v289_v49 = vpop.f32.mrb[4].mxu1 }
 0x105   :  { %394 = vst.msk [vmem:[%s730_s3 + $0x4] sm:$0xf] %vm392_vm1, %v465_v46  ;;  %402 = vst.msk [vmem:[%s730_s3 + $0x24] sm:$0xf] %vm392_vm1, %v473_v47  ;;  %v258_v50 = vadd.f32 %v645_v27, %v257_v48  ;;  %v290_v51 = vadd.f32 %v645_v27, %v289_v49  ;;  %v259_v52 = vpop.f32.mrb[5].mxu0  ;;  %v291_v53 = vpop.f32.mrb[5].mxu1 }
 0x106   :  { %v260_v54 = vpop.f32.mrb[6].mxu0  ;;  %v292_v55 = vpop.f32.mrb[6].mxu1 }
 0x107   :  { %v314_v56 = vmax.f32 %v258_v50, 0.0  ;;  %v322_v57 = vmax.f32 %v290_v51, 0.0  ;;  %v261_v58 = vadd.f32 %v645_v27, %v260_v54  ;;  %v293_v59 = vadd.f32 %v645_v27, %v292_v55  ;;  %v262_v60 = vpop.f32.mrb[7].mxu0  ;;  %v294_v61 = vpop.f32.mrb[7].mxu1 }
 0x109   :  { %v466_v62 = vpack.c.bf16 %v314_v56, %v314_v56  ;;  %v474_v63 = vpack.c.bf16 %v322_v57, %v322_v57  ;;  %v315_v0 = vmax.f32 %v261_v58, 0.0  ;;  %v323_v1 = vmax.f32 %v293_v59, 0.0 }
 0x10b   :  { %395 = vst.msk [vmem:[%s730_s3 + $0x8] sm:$0xf] %vm392_vm1, %v466_v62  ;;  %403 = vst.msk [vmem:[%s730_s3 + $0x28] sm:$0xf] %vm392_vm1, %v474_v63  ;;  %v467_v2 = vpack.c.bf16 %v315_v0, %v315_v0  ;;  %v475_v3 = vpack.c.bf16 %v323_v1, %v323_v1 }
 0x10c   :  { %v265_v4 = vpop.f32.mrb[8].mxu0  ;;  %v297_v5 = vpop.f32.mrb[8].mxu1 }
 0x10d   :  { %396 = vst.msk [vmem:[%s730_s3 + $0xc] sm:$0xf] %vm392_vm1, %v467_v2  ;;  %404 = vst.msk [vmem:[%s730_s3 + $0x2c] sm:$0xf] %vm392_vm1, %v475_v3  ;;  %v266_v6 = vadd.f32 %v645_v27, %v265_v4  ;;  %v298_v7 = vadd.f32 %v645_v27, %v297_v5  ;;  %v267_v8 = vpop.f32.mrb[9].mxu0  ;;  %v299_v9 = vpop.f32.mrb[9].mxu1 }
 0x10e   :  { %v268_v10 = vpop.f32.mrb[10].mxu0  ;;  %v300_v11 = vpop.f32.mrb[10].mxu1 }
 0x10f   :  { %v316_v12 = vmax.f32 %v266_v6, 0.0  ;;  %v324_v13 = vmax.f32 %v298_v7, 0.0  ;;  %v269_v14 = vadd.f32 %v645_v27, %v268_v10  ;;  %v301_v15 = vadd.f32 %v645_v27, %v300_v11  ;;  %v270_v16 = vpop.f32.mrb[11].mxu0  ;;  %v302_v17 = vpop.f32.mrb[11].mxu1 }
 0x111   :  { %v468_v18 = vpack.c.bf16 %v316_v12, %v316_v12  ;;  %v476_v19 = vpack.c.bf16 %v324_v13, %v324_v13  ;;  %v317_v20 = vmax.f32 %v269_v14, 0.0  ;;  %v325_v21 = vmax.f32 %v301_v15, 0.0 }
 0x113   :  { %397 = vst.msk [vmem:[%s730_s3 + $0x10] sm:$0xf] %vm392_vm1, %v468_v18  ;;  %405 = vst.msk [vmem:[%s730_s3 + $0x30] sm:$0xf] %vm392_vm1, %v476_v19  ;;  %v469_v22 = vpack.c.bf16 %v317_v20, %v317_v20  ;;  %v477_v23 = vpack.c.bf16 %v325_v21, %v325_v21 }
 0x114   :  { %v273_v24 = vpop.f32.mrb[12].mxu0  ;;  %v305_v25 = vpop.f32.mrb[12].mxu1 }
 0x115   :  { %398 = vst.msk [vmem:[%s730_s3 + $0x14] sm:$0xf] %vm392_vm1, %v469_v22  ;;  %406 = vst.msk [vmem:[%s730_s3 + $0x34] sm:$0xf] %vm392_vm1, %v477_v23  ;;  %v274_v26 = vadd.f32 %v645_v27, %v273_v24  ;;  %v306_v28 = vadd.f32 %v645_v27, %v305_v25  ;;  %v275_v29 = vpop.f32.mrb[13].mxu0  ;;  %v307_v30 = vpop.f32.mrb[13].mxu1 }
 0x116   :  { %v276_v31 = vpop.f32.mrb[14].mxu0  ;;  %v308_v32 = vpop.f32.mrb[14].mxu1 }
 0x117   :  { %v318_v33 = vmax.f32 %v274_v26, 0.0  ;;  %v326_v34 = vmax.f32 %v306_v28, 0.0  ;;  %v277_v35 = vadd.f32 %v645_v27, %v276_v31  ;;  %v309_v36 = vadd.f32 %v645_v27, %v308_v32  ;;  %v278_v37 = vpop.f32.mrb[15].mxu0  ;;  %v310_v38 = vpop.f32.mrb[15].mxu1 }
 0x119   :  { %v470_v39 = vpack.c.bf16 %v318_v33, %v318_v33  ;;  %v478_v40 = vpack.c.bf16 %v326_v34, %v326_v34  ;;  %v319_v41 = vmax.f32 %v277_v35, 0.0  ;;  %v327_v42 = vmax.f32 %v309_v36, 0.0 }
 0x11b   :  { %399 = vst.msk [vmem:[%s730_s3 + $0x18] sm:$0xf] %vm392_vm1, %v470_v39  ;;  %407 = vst.msk [vmem:[%s730_s3 + $0x38] sm:$0xf] %vm392_vm1, %v478_v40  ;;  %v471_v43 = vpack.c.bf16 %v319_v41, %v319_v41  ;;  %v479_v44 = vpack.c.bf16 %v327_v42, %v327_v42 }
 0x11d   :  { %400 = vst.msk [vmem:[%s730_s3 + $0x1c] sm:$0xf] %vm392_vm1, %v471_v43  ;;  %408 = vst.msk [vmem:[%s730_s3 + $0x3c] sm:$0xf] %vm392_vm1, %v479_v44 }

// kernel: tpu_custom_call.1
= control target key start
LH: loop header
LB: loop body
LE: loop exit
PB: predicated region body
PF: predicated region fallthrough
CT: control target
= control target key end

     0   :  { %vm423_vm0 = vcmask 519168   ;;  %s830_s1 = inlined_call_operand.vmem [shape: bf16[256,64], index: 1, kind: input, shape index: {}]   ;;  %s831_s0 = inlined_call_operand.vmem [shape: bf16[128,256], index: 0, kind: input, shape index: {}]   ;;  %s832_s2 = inlined_call_operand.vmem [shape: f32[1,64], index: 2, kind: input, shape index: {}]   ;;  %s833_s3 = inlined_call_operand.vmem [shape: bf16[128,64], index: 3, kind: output, shape index: {}]  }
   0x1   :  { %v589_v0 = vld [vmem:[%s830_s1 + $0x40] sm:$0xff]   ;;  %v591_v2 = vld [vmem:[%s830_s1 + $0x48] sm:$0xff]   ;;  %v593_v4 = vld [vmem:[%s830_s1 + $0x50] sm:$0xff]  }
   0x2   :  { %v590_v1 = vld [vmem:[%s830_s1] sm:$0xff]   ;;  %509 = vmatprep.subr.bf16.mxu0 %v589_v0  ;;  %573 = vmatprep.subr.bf16.mxu1 %v589_v0  ;;  %v592_v3 = vld [vmem:[%s830_s1 + $0x8] sm:$0xff]   ;;  %v594_v5 = vld [vmem:[%s830_s1 + $0x10] sm:$0xff]  }
   0x3   :  { %510 = vmatpush3.bf16.msra.mxu0 %v590_v1  ;;  %581 = vmatpush3.bf16.msra.mxu1 %v590_v1  ;;  %v595_v6 = vld [vmem:[%s830_s1 + $0x58] sm:$0xff]   ;;  %v597_v8 = vld [vmem:[%s830_s1 + $0x60] sm:$0xff]   ;;  %v599_v10 = vld [vmem:[%s830_s1 + $0x68] sm:$0xff]  }
   0x4   :  { %511 = vmatprep.subr.bf16.mxu0 %v591_v2  ;;  %574 = vmatprep.subr.bf16.mxu1 %v591_v2  ;;  %v596_v7 = vld [vmem:[%s830_s1 + $0x18] sm:$0xff]   ;;  %v598_v9 = vld [vmem:[%s830_s1 + $0x20] sm:$0xff]   ;;  %v600_v13 = vld [vmem:[%s830_s1 + $0x28] sm:$0xff]  }
   0x5   :  { %v607_v11 = vld [vmem:[%s831_s0 + $0x4] ss:$8 sps:$4 sm:$0xff]   ;;  %v601_v14 = vld [vmem:[%s830_s1 + $0x70] sm:$0xff]   ;;  %v603_v16 = vld [vmem:[%s830_s1 + $0x78] sm:$0xff]  }
   0x6   :  { %v610_v12 = vld [vmem:[%s831_s0 + $0x44] ss:$8 sps:$4 sm:$0xff]   ;;  %278 = vmatprep.mubr.bf16.mxu0 %v607_v11  ;;  %v602_v15 = vld [vmem:[%s830_s1 + $0x30] sm:$0xff]   ;;  %v604_v17 = vld [vmem:[%s830_s1 + $0x38] sm:$0xff]  }
   0x7   :  { %512 = vmatpush3.bf16.msra.mxu0 %v592_v3  ;;  %582 = vmatpush3.bf16.msra.mxu1 %v592_v3  ;;  %v605_v18 = vld [vmem:[%s831_s0] ss:$8 sps:$4 sm:$0xff]   ;;  %v611_v20 = vld [vmem:[%s831_s0 + $0x14] ss:$8 sps:$4 sm:$0xff]   ;;  %v615_v22 = vld [vmem:[%s831_s0 + $0x10] ss:$8 sps:$4 sm:$0xff]  }
   0x8   :  { %513 = vmatprep.subr.bf16.mxu0 %v593_v4  ;;  %575 = vmatprep.subr.bf16.mxu1 %v593_v4  ;;  %v608_v19 = vld [vmem:[%s831_s0 + $0x40] ss:$8 sps:$4 sm:$0xff]   ;;  %v613_v21 = vld [vmem:[%s831_s0 + $0x54] ss:$8 sps:$4 sm:$0xff]   ;;  %v616_v23 = vld [vmem:[%s831_s0 + $0x50] ss:$8 sps:$4 sm:$0xff]  }
   0x9   :  { %310 = vmatprep.mubr.bf16.mxu1 %v610_v12  ;;  %v617_v24 = vld [vmem:[%s831_s0 + $0x24] ss:$8 sps:$4 sm:$0xff]   ;;  %v621_v26 = vld [vmem:[%s831_s0 + $0x20] ss:$8 sps:$4 sm:$0xff]   ;;  %v623_v28 = vld [vmem:[%s831_s0 + $0x34] ss:$8 sps:$4 sm:$0xff]  }
   0xa   :  { %v619_v25 = vld [vmem:[%s831_s0 + $0x64] ss:$8 sps:$4 sm:$0xff]   ;;  %v622_v27 = vld [vmem:[%s831_s0 + $0x60] ss:$8 sps:$4 sm:$0xff]   ;;  %v625_v29 = vld [vmem:[%s831_s0 + $0x74] ss:$8 sps:$4 sm:$0xff]  }
   0xb   :  { %514 = vmatpush3.bf16.msra.mxu0 %v594_v5  ;;  %583 = vmatpush3.bf16.msra.mxu1 %v594_v5  ;;  %v627_v30 = vld [vmem:[%s831_s0 + $0x30] ss:$8 sps:$4 sm:$0xff]   ;;  %v748_v34 = vld [vmem:[%s832_s2] ss:$0 sm:$0xff] }
   0xc   :  { %515 = vmatprep.subr.bf16.mxu0 %v595_v6  ;;  %576 = vmatprep.subr.bf16.mxu1 %v595_v6  ;;  %v628_v31 = vld [vmem:[%s831_s0 + $0x70] ss:$8 sps:$4 sm:$0xff]  }
   0xf   :  { %516 = vmatpush3.bf16.msra.mxu0 %v596_v7  ;;  %584 = vmatpush3.bf16.msra.mxu1 %v596_v7 }
  0x10   :  { %517 = vmatprep.subr.bf16.mxu0 %v597_v8  ;;  %577 = vmatprep.subr.bf16.mxu1 %v597_v8 }
  0x13   :  { %518 = vmatpush3.bf16.msra.mxu0 %v598_v9  ;;  %585 = vmatpush3.bf16.msra.mxu1 %v598_v9 }
  0x14   :  { %519 = vmatprep.subr.bf16.mxu0 %v599_v10  ;;  %578 = vmatprep.subr.bf16.mxu1 %v599_v10 }
  0x17   :  { %520 = vmatpush3.bf16.msra.mxu0 %v600_v13  ;;  %586 = vmatpush3.bf16.msra.mxu1 %v600_v13 }
  0x18   :  { %521 = vmatprep.subr.bf16.mxu0 %v601_v14  ;;  %579 = vmatprep.subr.bf16.mxu1 %v601_v14 }
  0x1b   :  { %522 = vmatpush3.bf16.msra.mxu0 %v602_v15  ;;  %587 = vmatpush3.bf16.msra.mxu1 %v602_v15 }
  0x1c   :  { %523 = vmatprep.subr.bf16.mxu0 %v603_v16  ;;  %580 = vmatprep.subr.bf16.mxu1 %v603_v16 }
  0x1f   :  { %524 = vmatpush3.bf16.msra.mxu0 %v604_v17  ;;  %588 = vmatpush3.bf16.msra.mxu1 %v604_v17 }
  0x22   :  { %279 = vmatmul.mubr.bf16.vlgmr.msra.gmra.mrb[0].mxu0 %v605_v18  ;;  %311 = vmatmul.mubr.bf16.vlgmr.msra.gmra.mrb[0].mxu1 %v608_v19 }
  0x23   :  { %286 = vmatprep.mubr.bf16.mxu0 %v611_v20  ;;  %318 = vmatprep.mubr.bf16.mxu1 %v613_v21 }
  0x2a   :  { %287 = vmatmul.mubr.bf16.gmra.mrb[4].mxu0 %v615_v22  ;;  %319 = vmatmul.mubr.bf16.gmra.mrb[4].mxu1 %v616_v23 }
  0x2b   :  { %294 = vmatprep.mubr.bf16.mxu0 %v617_v24  ;;  %326 = vmatprep.mubr.bf16.mxu1 %v619_v25 }
  0x32   :  { %295 = vmatmul.mubr.bf16.gmra.mrb[8].mxu0 %v621_v26  ;;  %327 = vmatmul.mubr.bf16.gmra.mrb[8].mxu1 %v622_v27 }
  0x33   :  { %302 = vmatprep.mubr.bf16.mxu0 %v623_v28  ;;  %334 = vmatprep.mubr.bf16.mxu1 %v625_v29 }
  0x3a   :  { %303 = vmatmul.mubr.bf16.gmra.mrb[12].mxu0 %v627_v30  ;;  %335 = vmatmul.mubr.bf16.gmra.mrb[12].mxu1 %v628_v31 }
  0xf5   :  { %v525_v32 = vpop.f32.mrb[0].mxu0  ;;  %v549_v33 = vpop.f32.mrb[0].mxu1 }
  0xf6   :  { %v526_v35 = vpop.f32.mrb[1].mxu0  ;;  %v550_v36 = vpop.f32.mrb[1].mxu1 }
  0xf7   :  { %v527_v37 = vadd.f32 %v526_v35, %v525_v32  ;;  %v551_v38 = vadd.f32 %v550_v36, %v549_v33  ;;  %v528_v39 = vpop.f32.mrb[2].mxu0  ;;  %v552_v40 = vpop.f32.mrb[2].mxu1 }
  0xf8   :  { %v529_v41 = vpop.f32.mrb[3].mxu0  ;;  %v553_v42 = vpop.f32.mrb[3].mxu1 }
  0xf9   :  { %v281_v43 = vadd.f32 %v527_v37, %v748_v34  ;;  %v313_v44 = vadd.f32 %v551_v38, %v748_v34  ;;  %v530_v45 = vadd.f32 %v529_v41, %v528_v39  ;;  %v554_v46 = vadd.f32 %v553_v42, %v552_v40 }
  0xfb   :  { %v343_v47 = vmax.f32 %v281_v43, 0.0  ;;  %v351_v48 = vmax.f32 %v313_v44, 0.0  ;;  %v284_v49 = vadd.f32 %v530_v45, %v748_v34  ;;  %v316_v50 = vadd.f32 %v554_v46, %v748_v34 }
  0xfd   :  { %v493_v51 = vpack.c.bf16 %v343_v47, %v343_v47  ;;  %v501_v52 = vpack.c.bf16 %v351_v48, %v351_v48  ;;  %v344_v53 = vmax.f32 %v284_v49, 0.0  ;;  %v352_v54 = vmax.f32 %v316_v50, 0.0  ;;  %v531_v55 = vpop.f32.mrb[4].mxu0  ;;  %v555_v56 = vpop.f32.mrb[4].mxu1 }
  0xfe   :  { %v532_v57 = vpop.f32.mrb[5].mxu0  ;;  %v556_v58 = vpop.f32.mrb[5].mxu1 }
  0xff   :  { %424 = vst.msk [vmem:[%s833_s3] sm:$0xf] %vm423_vm0, %v493_v51  ;;  %432 = vst.msk [vmem:[%s833_s3 + $0x20] sm:$0xf] %vm423_vm0, %v501_v52  ;;  %v494_v59 = vpack.c.bf16 %v344_v53, %v344_v53  ;;  %v502_v60 = vpack.c.bf16 %v352_v54, %v352_v54  ;;  %v533_v61 = vadd.f32 %v532_v57, %v531_v55  ;;  %v534_v63 = vpop.f32.mrb[6].mxu0  ;;  %v558_v0 = vpop.f32.mrb[6].mxu1 }
 0x100   :  { %v557_v62 = vadd.f32 %v556_v58, %v555_v56  ;;  %v535_v1 = vpop.f32.mrb[7].mxu0  ;;  %v559_v2 = vpop.f32.mrb[7].mxu1 }
 0x101   :  { %425 = vst.msk [vmem:[%s833_s3 + $0x4] sm:$0xf] %vm423_vm0, %v494_v59  ;;  %433 = vst.msk [vmem:[%s833_s3 + $0x24] sm:$0xf] %vm423_vm0, %v502_v60  ;;  %v289_v3 = vadd.f32 %v533_v61, %v748_v34  ;;  %v536_v5 = vadd.f32 %v535_v1, %v534_v63  ;;  %v560_v6 = vadd.f32 %v559_v2, %v558_v0 }
 0x102   :  { %v321_v4 = vadd.f32 %v557_v62, %v748_v34 }
 0x103   :  { %v345_v7 = vmax.f32 %v289_v3, 0.0  ;;  %v292_v9 = vadd.f32 %v536_v5, %v748_v34  ;;  %v324_v10 = vadd.f32 %v560_v6, %v748_v34 }
 0x104   :  { %v353_v8 = vmax.f32 %v321_v4, 0.0 }
 0x105   :  { %v495_v11 = vpack.c.bf16 %v345_v7, %v345_v7  ;;  %v346_v13 = vmax.f32 %v292_v9, 0.0  ;;  %v354_v14 = vmax.f32 %v324_v10, 0.0  ;;  %v537_v15 = vpop.f32.mrb[8].mxu0  ;;  %v561_v16 = vpop.f32.mrb[8].mxu1 }
 0x106   :  { %v503_v12 = vpack.c.bf16 %v353_v8, %v353_v8  ;;  %v538_v17 = vpop.f32.mrb[9].mxu0  ;;  %v562_v18 = vpop.f32.mrb[9].mxu1 }
 0x107   :  { %426 = vst.msk [vmem:[%s833_s3 + $0x8] sm:$0xf] %vm423_vm0, %v495_v11  ;;  %v496_v19 = vpack.c.bf16 %v346_v13, %v346_v13  ;;  %v504_v20 = vpack.c.bf16 %v354_v14, %v354_v14  ;;  %v539_v21 = vadd.f32 %v538_v17, %v537_v15  ;;  %v563_v22 = vadd.f32 %v562_v18, %v561_v16  ;;  %v540_v23 = vpop.f32.mrb[10].mxu0  ;;  %v564_v24 = vpop.f32.mrb[10].mxu1 }
 0x108   :  { %434 = vst.msk [vmem:[%s833_s3 + $0x28] sm:$0xf] %vm423_vm0, %v503_v12  ;;  %v541_v25 = vpop.f32.mrb[11].mxu0  ;;  %v565_v26 = vpop.f32.mrb[11].mxu1 }
 0x109   :  { %427 = vst.msk [vmem:[%s833_s3 + $0xc] sm:$0xf] %vm423_vm0, %v496_v19  ;;  %435 = vst.msk [vmem:[%s833_s3 + $0x2c] sm:$0xf] %vm423_vm0, %v504_v20  ;;  %v297_v27 = vadd.f32 %v539_v21, %v748_v34  ;;  %v329_v28 = vadd.f32 %v563_v22, %v748_v34  ;;  %v542_v29 = vadd.f32 %v541_v25, %v540_v23 }
 0x10a   :  { %v566_v30 = vadd.f32 %v565_v26, %v564_v24 }
 0x10b   :  { %v347_v31 = vmax.f32 %v297_v27, 0.0  ;;  %v355_v32 = vmax.f32 %v329_v28, 0.0  ;;  %v300_v33 = vadd.f32 %v542_v29, %v748_v34 }
 0x10c   :  { %v332_v35 = vadd.f32 %v566_v30, %v748_v34 }
 0x10d   :  { %v497_v36 = vpack.c.bf16 %v347_v31, %v347_v31  ;;  %v505_v37 = vpack.c.bf16 %v355_v32, %v355_v32  ;;  %v348_v38 = vmax.f32 %v300_v33, 0.0  ;;  %v543_v40 = vpop.f32.mrb[12].mxu0  ;;  %v567_v41 = vpop.f32.mrb[12].mxu1 }
 0x10e   :  { %v356_v39 = vmax.f32 %v332_v35, 0.0  ;;  %v544_v42 = vpop.f32.mrb[13].mxu0  ;;  %v568_v43 = vpop.f32.mrb[13].mxu1 }
 0x10f   :  { %428 = vst.msk [vmem:[%s833_s3 + $0x10] sm:$0xf] %vm423_vm0, %v497_v36  ;;  %436 = vst.msk [vmem:[%s833_s3 + $0x30] sm:$0xf] %vm423_vm0, %v505_v37  ;;  %v498_v44 = vpack.c.bf16 %v348_v38, %v348_v38  ;;  %v545_v46 = vadd.f32 %v544_v42, %v543_v40  ;;  %v569_v47 = vadd.f32 %v568_v43, %v567_v41  ;;  %v546_v48 = vpop.f32.mrb[14].mxu0  ;;  %v570_v49 = vpop.f32.mrb[14].mxu1 }
 0x110   :  { %v506_v45 = vpack.c.bf16 %v356_v39, %v356_v39  ;;  %v547_v50 = vpop.f32.mrb[15].mxu0  ;;  %v571_v51 = vpop.f32.mrb[15].mxu1 }
 0x111   :  { %429 = vst.msk [vmem:[%s833_s3 + $0x14] sm:$0xf] %vm423_vm0, %v498_v44  ;;  %v305_v52 = vadd.f32 %v545_v46, %v748_v34  ;;  %v337_v53 = vadd.f32 %v569_v47, %v748_v34  ;;  %v548_v54 = vadd.f32 %v547_v50, %v546_v48  ;;  %v572_v55 = vadd.f32 %v571_v51, %v570_v49 }
 0x112   :  { %437 = vst.msk [vmem:[%s833_s3 + $0x34] sm:$0xf] %vm423_vm0, %v506_v45 }
 0x113   :  { %v349_v56 = vmax.f32 %v305_v52, 0.0  ;;  %v357_v57 = vmax.f32 %v337_v53, 0.0  ;;  %v308_v58 = vadd.f32 %v548_v54, %v748_v34  ;;  %v340_v59 = vadd.f32 %v572_v55, %v748_v34 }
 0x115   :  { %v499_v60 = vpack.c.bf16 %v349_v56, %v349_v56  ;;  %v507_v61 = vpack.c.bf16 %v357_v57, %v357_v57  ;;  %v350_v62 = vmax.f32 %v308_v58, 0.0  ;;  %v358_v63 = vmax.f32 %v340_v59, 0.0 }
 0x117   :  { %430 = vst.msk [vmem:[%s833_s3 + $0x18] sm:$0xf] %vm423_vm0, %v499_v60  ;;  %438 = vst.msk [vmem:[%s833_s3 + $0x38] sm:$0xf] %vm423_vm0, %v507_v61  ;;  %v500_v0 = vpack.c.bf16 %v350_v62, %v350_v62  ;;  %v508_v1 = vpack.c.bf16 %v358_v63, %v358_v63 }
 0x119   :  { %431 = vst.msk [vmem:[%s833_s3 + $0x1c] sm:$0xf] %vm423_vm0, %v500_v0  ;;  %439 = vst.msk [vmem:[%s833_s3 + $0x3c] sm:$0xf] %vm423_vm0, %v508_v1 }

</bundles_post_ra>
